<compile_context>
chip_gen: v7x
topology: tpu7x:2x2x1
jax: 0.10.0
libtpu: 0.0.40
codegen_flags: <defaults>
</compile_context>

<pallas_src>
import jax
import jax.numpy as jnp
from jax.experimental import pallas as pl
from jax.experimental.pallas import tpu as pltpu

IMG_DIM = 512        # ResNet feature size (fixed by the module: hidden + 512)
TXT_DIM = 32         # stand-in for bert_config.hidden_size (small for test)
NUM_CLASSES = 2
BATCH = 8


def _concat_linear_kernel(b_ref, img_ref, txt_ref, w_ref, o_ref):
    """out = concat([img, txt], 1) @ W.T + b, concat-free, MXU-free.

    b_ref : (2,)        f32 in SMEM   (bias scalars)
    img   : (B, 512)    f32 in VMEM
    txt   : (B, H)      f32 in VMEM
    w     : (2, 512+H)  f32 in VMEM   (PyTorch Linear layout, lane-dense)
    o     : (B, 2)      f32 in VMEM
    """
    img = img_ref[...]                      # (B, 512)
    txt = txt_ref[...]                      # (B, H)
    w = w_ref[...]                          # (2, 512+H)
    w_img = w[:, :IMG_DIM]                  # (2, 512)  static slice, lane-tile aligned
    w_txt = w[:, IMG_DIM:]                  # (2, H)

    cols = []
    for c in range(NUM_CLASSES):            # static unroll over 2 classes
        # VPU multiply (broadcast weight row over the batch sublanes)
        # + XLU lane-reduce; MXU stays idle on purpose (N=2 output).
        acc = jnp.sum(img * w_img[c:c + 1, :], axis=-1, keepdims=True)
        acc = acc + jnp.sum(txt * w_txt[c:c + 1, :], axis=-1, keepdims=True)
        cols.append(acc + b_ref[c])         # SMEM scalar bias, rides a VALU slot
    o_ref[...] = jnp.concatenate(cols, axis=-1).astype(o_ref.dtype)


def baseline_classifier(image_embeddings, pooled_output, clf_weight, clf_bias):
    """Pallas equivalent of: self.clf(torch.cat((image_emb, pooled), dim=1)).

    image_embeddings: (B, 512)   float32  -- resnet(images)
    pooled_output   : (B, H)     float32  -- bertModel(...).pooler_output
    clf_weight      : (2, H+512) float32  -- PyTorch Linear weight layout (kept as-is)
    clf_bias        : (2,)       float32
    """
    B = image_embeddings.shape[0]
    H = pooled_output.shape[1]
    D_in = IMG_DIM + H
    assert clf_weight.shape == (NUM_CLASSES, D_in)
    assert clf_bias.shape == (NUM_CLASSES,)

    vmem = pltpu.MemorySpace.VMEM
    smem = pltpu.MemorySpace.SMEM

    flops = 2 * B * D_in * NUM_CLASSES
    bytes_accessed = 4 * (B * IMG_DIM + B * H + NUM_CLASSES * D_in
                          + NUM_CLASSES + B * NUM_CLASSES)

    return pl.pallas_call(
        _concat_linear_kernel,
        out_shape=jax.ShapeDtypeStruct((B, NUM_CLASSES), jnp.float32),
        in_specs=[
            pl.BlockSpec(memory_space=smem),                                # bias scalars
            pl.BlockSpec((B, IMG_DIM), lambda: (0, 0), memory_space=vmem),  # image emb
            pl.BlockSpec((B, H), lambda: (0, 0), memory_space=vmem),        # pooled emb
            pl.BlockSpec((NUM_CLASSES, D_in), lambda: (0, 0),
                         memory_space=vmem),                                # weight (lane-dense)
        ],
        out_specs=pl.BlockSpec((B, NUM_CLASSES), lambda: (0, 0),
                               memory_space=vmem),
        cost_estimate=pl.CostEstimate(flops=flops, transcendentals=0,
                                      bytes_accessed=bytes_accessed),
        compiler_params=pltpu.CompilerParams(vmem_limit_bytes=32 * 1024 * 1024),
    )(clf_bias, image_embeddings, pooled_output, clf_weight)


def _reference(image_embeddings, pooled_output, clf_weight, clf_bias):
    full = jnp.concatenate([image_embeddings, pooled_output], axis=1)
    return full @ clf_weight.T + clf_bias


if __name__ == "__main__":
    key = jax.random.PRNGKey(0)
    k_img, k_txt, k_w, k_b = jax.random.split(key, 4)

    # Stand-ins for the backbone outputs (resnet(images), bert pooler_output).
    image_embeddings = jax.random.normal(k_img, (BATCH, IMG_DIM), jnp.float32)
    pooled_output = jax.random.normal(k_txt, (BATCH, TXT_DIM), jnp.float32)

    # Deterministic classifier parameters (nn.Linear(hidden+512, 2) layout).
    concat_dim = IMG_DIM + TXT_DIM
    clf_weight = jax.random.normal(k_w, (NUM_CLASSES, concat_dim),
                                   jnp.float32) * 0.02
    clf_bias = jax.random.normal(k_b, (NUM_CLASSES,), jnp.float32) * 0.02

    out = baseline_classifier(image_embeddings, pooled_output,
                              clf_weight, clf_bias)
    out = jax.block_until_ready(out)

    ref = _reference(image_embeddings, pooled_output, clf_weight, clf_bias)
    assert out.shape == (BATCH, NUM_CLASSES)
    assert jnp.allclose(out, ref, atol=1e-4, rtol=1e-4)

    print("KERNEL_OK")
</pallas_src>

<mosaic_0001>
module attributes {stable_mosaic.version = 11 : i64} {
  func.func @_concat_linear_kernel(%arg0: memref<2xf32, #tpu.memory_space<smem>>, %arg1: memref<8x512xf32, #tpu.memory_space<vmem>>, %arg2: memref<8x32xf32, #tpu.memory_space<vmem>>, %arg3: memref<2x544xf32, #tpu.memory_space<vmem>>, %arg4: memref<8x2xf32, #tpu.memory_space<vmem>>) attributes {dimension_semantics = [], scalar_prefetch = 0 : i64, scratch_operands = 0 : i64, tpu.core_type = #tpu.core_type<tc>} {
    %c0 = arith.constant 0 : index
    %c0_0 = arith.constant 0 : index
    %0 = vector.load %arg1[%c0, %c0_0] : memref<8x512xf32, #tpu.memory_space<vmem>>, vector<8x512xf32>
    %c0_1 = arith.constant 0 : index
    %c0_2 = arith.constant 0 : index
    %1 = vector.load %arg2[%c0_1, %c0_2] : memref<8x32xf32, #tpu.memory_space<vmem>>, vector<8x32xf32>
    %c0_3 = arith.constant 0 : index
    %c0_4 = arith.constant 0 : index
    %2 = vector.load %arg3[%c0_3, %c0_4] : memref<2x544xf32, #tpu.memory_space<vmem>>, vector<2x544xf32>
    %3 = vector.extract_strided_slice %2 {offsets = [0, 0], sizes = [2, 512], strides = [1, 1]} : vector<2x544xf32> to vector<2x512xf32>
    %4 = vector.extract_strided_slice %2 {offsets = [0, 512], sizes = [2, 32], strides = [1, 1]} : vector<2x544xf32> to vector<2x32xf32>
    %5 = vector.extract_strided_slice %3 {offsets = [0, 0], sizes = [1, 512], strides = [1, 1]} : vector<2x512xf32> to vector<1x512xf32>
    %6 = vector.broadcast %5 : vector<1x512xf32> to vector<8x512xf32>
    %7 = arith.mulf %0, %6 : vector<8x512xf32>
    %cst = arith.constant dense<0.000000e+00> : vector<8xf32>
    %8 = vector.multi_reduction <add>, %7, %cst [1] : vector<8x512xf32> to vector<8xf32>
    %9 = vector.shape_cast %8 : vector<8xf32> to vector<8x1xf32>
    %10 = vector.extract_strided_slice %4 {offsets = [0, 0], sizes = [1, 32], strides = [1, 1]} : vector<2x32xf32> to vector<1x32xf32>
    %11 = vector.broadcast %10 : vector<1x32xf32> to vector<8x32xf32>
    %12 = arith.mulf %1, %11 : vector<8x32xf32>
    %cst_5 = arith.constant dense<0.000000e+00> : vector<8xf32>
    %13 = vector.multi_reduction <add>, %12, %cst_5 [1] : vector<8x32xf32> to vector<8xf32>
    %14 = vector.shape_cast %13 : vector<8xf32> to vector<8x1xf32>
    %15 = arith.addf %9, %14 : vector<8x1xf32>
    %c0_6 = arith.constant 0 : index
    %16 = memref.load %arg0[%c0_6] : memref<2xf32, #tpu.memory_space<smem>>
    %17 = vector.broadcast %16 : f32 to vector<8x1xf32>
    %18 = arith.addf %15, %17 : vector<8x1xf32>
    %19 = vector.extract_strided_slice %3 {offsets = [1, 0], sizes = [1, 512], strides = [1, 1]} : vector<2x512xf32> to vector<1x512xf32>
    %20 = vector.broadcast %19 : vector<1x512xf32> to vector<8x512xf32>
    %21 = arith.mulf %0, %20 : vector<8x512xf32>
    %cst_7 = arith.constant dense<0.000000e+00> : vector<8xf32>
    %22 = vector.multi_reduction <add>, %21, %cst_7 [1] : vector<8x512xf32> to vector<8xf32>
    %23 = vector.shape_cast %22 : vector<8xf32> to vector<8x1xf32>
    %24 = vector.extract_strided_slice %4 {offsets = [1, 0], sizes = [1, 32], strides = [1, 1]} : vector<2x32xf32> to vector<1x32xf32>
    %25 = vector.broadcast %24 : vector<1x32xf32> to vector<8x32xf32>
    %26 = arith.mulf %1, %25 : vector<8x32xf32>
    %cst_8 = arith.constant dense<0.000000e+00> : vector<8xf32>
    %27 = vector.multi_reduction <add>, %26, %cst_8 [1] : vector<8x32xf32> to vector<8xf32>
    %28 = vector.shape_cast %27 : vector<8xf32> to vector<8x1xf32>
    %29 = arith.addf %23, %28 : vector<8x1xf32>
    %c1 = arith.constant 1 : index
    %30 = memref.load %arg0[%c1] : memref<2xf32, #tpu.memory_space<smem>>
    %31 = vector.broadcast %30 : f32 to vector<8x1xf32>
    %32 = arith.addf %29, %31 : vector<8x1xf32>
    %33 = tpu.concatenate %18, %32 in 1 : vector<8x1xf32>, vector<8x1xf32> -> vector<8x2xf32>
    %c0_9 = arith.constant 0 : index
    %c0_10 = arith.constant 0 : index
    %34 = vector.load %arg4[%c0_9, %c0_10] : memref<8x2xf32, #tpu.memory_space<vmem>>, vector<8x2xf32>
    tpu.vector_store %arg4[%c0_9, %c0_10], %33 {strides = array<i32>} : memref<8x2xf32, #tpu.memory_space<vmem>>, vector<8x2xf32>,
    return
  }
}

</mosaic_0001>

<bundles_post_ra>
// kernel: tpu_custom_call.1
= control target key start
LH: loop header
LB: loop body
LE: loop exit
PB: predicated region body
PF: predicated region fallthrough
CT: control target
= control target key end

     0   :  { %9 = vsyncpa [#allocation4], 0  ;;  %s323_s0 = inlined_call_operand.hbm [shape: f32[2], index: 0, kind: input, shape index: {}]   ;;  %s324_s1 = inlined_call_operand.hbm [shape: f32[8,512], index: 1, kind: input, shape index: {}]   ;;  %s325_s2 = inlined_call_operand.hbm [shape: f32[8,32], index: 2, kind: input, shape index: {}]   ;;  %s326_s3 = inlined_call_operand.vmem [shape: f32[2,544], index: 3, kind: input, shape index: {}]   ;;  %s327_s4 = inlined_call_operand.vmem [shape: f32[8,2], index: 4, kind: output, shape index: {}]  }
   0x1   :  { %10 = vsyncpa [#allocation3], 0 }
   0x2   :  { %11 = vsyncpa [#allocation7], 0  ;;  %s190_s17 = scalar_lea.hbm %s323_s0, 16 }
   0x3   :  { %p191_p0 = scmp.ne.s32.totalorder %s323_s0, %s190_s17  ;;  %p194_p1 = scmp.lt.u32.totalorder %s190_s17, %s323_s0 }
   0x5   :  { %p196_p2 = pnand %p194_p1, %p191_p0 }
   0x7   :  { %199 = shalt.err (!%p196_p2)
}
   0x8   :  { %s250_s22 = smov [#allocation2]   ;;  %s251_s25 = smov [#allocation5]  }
   0x9   :  { %19 = dma.hbm_to_smem %s323_s0, 16, %s250_s22, [#allocation4]  }
   0xa   :  { %s26_s26 = sshll.u32 %s251_s25, 4  ;;  %s252_s27 = smov [#allocation6]   ;;  %s27_s26 = int_to_ptr.vmem [resolvable:$true] %s26_s26 }
   0xb   :  { %s36_s28 = sshll.u32 %s252_s27, 4  ;;  %s200_s5 = scalar_lea.hbm %s324_s1, 512  ;;  %s37_s28 = int_to_ptr.vmem [resolvable:$true] %s36_s28 }
   0xc   :  { %p201_p3 = scmp.ne.s32.totalorder %s324_s1, %s200_s5  ;;  %p204_p4 = scmp.lt.u32.totalorder %s200_s5, %s324_s1 }
   0xe   :  { %p206_p5 = pnand %p204_p4, %p201_p3 }
  0x10   :  { %209 = shalt.err (!%p206_p5)
}
  0x11   :  { %s210_s0 = scalar_lea.vmem %s27_s26, 512  ;;  %p215_p7 = scmp.lt.s32.totalorder %s27_s26, %s27_s26 }
  0x12   :  { %p211_p6 = scmp.ne.s32.totalorder %s27_s26, %s210_s0  ;;  %p216_p8 = scmp.lt.s32.totalorder %s210_s0, %s210_s0 }
  0x14   :  { %p217_p9 = por %p216_p8, %p215_p7 }
  0x16   :  { %p218_p10 = pnand %p217_p9, %p211_p6 }
  0x18   :  { %221 = shalt.err (!%p218_p10)
}
  0x19   :  { %29 = dma.hbm_to_vmem [thread:$0]  %s324_s1, 512, %s27_s26, [#allocation3]  }
  0x1a   :  { %s222_s14 = scalar_lea.hbm %s325_s2, 128 }
  0x1b   :  { %p223_p11 = scmp.ne.s32.totalorder %s325_s2, %s222_s14  ;;  %p226_p12 = scmp.lt.u32.totalorder %s222_s14, %s325_s2 }
  0x1d   :  { %p228_p13 = pnand %p226_p12, %p223_p11 }
  0x1f   :  { %231 = shalt.err (!%p228_p13)
}
  0x20   :  { %s232_s19 = scalar_lea.vmem %s37_s28, 128  ;;  %p237_p1 = scmp.lt.s32.totalorder %s37_s28, %s37_s28 }
  0x21   :  { %p233_p0 = scmp.ne.s32.totalorder %s37_s28, %s232_s19  ;;  %p238_p2 = scmp.lt.s32.totalorder %s232_s19, %s232_s19 }
  0x23   :  { %p239_p3 = por %p238_p2, %p237_p1 }
  0x25   :  { %p240_p4 = pnand %p239_p3, %p233_p0 }
  0x27   :  { %243 = shalt.err (!%p240_p4)
}
  0x28   :  { %39 = dma.hbm_to_vmem [thread:$0]  %s325_s2, 128, %s37_s28, [#allocation7]  }
  0x29   :  { %244 = dma.done.wait [#allocation4], 16  }
  0x2a   :  { %245 = vsyncadd [#allocation4], 4294967280 }
  0x2b   :  { %246 = dma.done.wait [#allocation3], 512  }
  0x2c   :  { %247 = vsyncadd [#allocation3], 4294966784 }
  0x2d   :  { %248 = dma.done.wait [#allocation7], 128  }
  0x2e   :  { %249 = vsyncadd [#allocation7], 4294967168 }
  0x2f   :  { %51 = sfence }
  0x30   :  { %v60_v0 = vlaneseq  ;;  %v57_v2 = vld [vmem:[%s326_s3] sm:$0xff]  ;;  %v52_v15 = vld [vmem:[#allocation5] sm:$0xff]  ;;  %v54_v17 = vld [vmem:[#allocation5 + $0x10] sm:$0xff]  ;;  %vm110_vm0 = vcmask 261120   ;;  %s115_s24 = sld [smem:[#allocation2]]  ;;  %vm175_vm1 = vcmask 7168  }
  0x31   :  { %v53_v16 = vld [vmem:[#allocation5 + $0x8] sm:$0xff]  ;;  %v55_v26 = vld [vmem:[#allocation5 + $0x18] sm:$0xff]  ;;  %v58_v31 = vld [vmem:[%s326_s3 + $0x8] sm:$0x3]  ;;  %s186_s3 = sld [smem:[#allocation2 + $0x1]]  ;;  %vm177_vm2 = vcmask 15360  }
  0x32   :  { %v61_v1 = vshrl.u32 %v60_v0, 7  ;;  %v56_v40 = vld [vmem:[#allocation6] sm:$0xff] }
  0x34   :  { %v120_v3 = vsub.s32 1, %v61_v1  ;;  %v124_v4 = vsub.s32 3, %v61_v1  ;;  %v128_v5 = vsub.s32 5, %v61_v1  ;;  %v132_v6 = vsub.s32 7, %v61_v1 }
  0x35   :  { %v62_v7 = vsub.s32 0, %v61_v1  ;;  %v66_v8 = vsub.s32 2, %v61_v1  ;;  %v70_v9 = vsub.s32 4, %v61_v1  ;;  %v74_v10 = vsub.s32 6, %v61_v1 }
  0x36   :  { %v121_v11 = vrot.slane %v57_v2, %v120_v3  ;;  %v125_v12 = vrot.slane %v57_v2, %v124_v4  ;;  %v129_v13 = vrot.slane %v57_v2, %v128_v5  ;;  %v133_v14 = vrot.slane %v57_v2, %v132_v6 }
  0x37   :  { %v63_v18 = vrot.slane %v57_v2, %v62_v7  ;;  %v67_v19 = vrot.slane %v57_v2, %v66_v8  ;;  %v71_v20 = vrot.slane %v57_v2, %v70_v9  ;;  %v75_v21 = vrot.slane %v57_v2, %v74_v10 }
  0x38   :  { %v141_v22 = vrot.slane %v121_v11, %v120_v3  ;;  %v145_v23 = vrot.slane %v125_v12, %v120_v3  ;;  %v149_v24 = vrot.slane %v129_v13, %v120_v3  ;;  %v153_v25 = vrot.slane %v133_v14, %v120_v3 }
  0x39   :  { %v83_v27 = vrot.slane %v63_v18, %v62_v7  ;;  %v87_v28 = vrot.slane %v67_v19, %v62_v7  ;;  %v91_v29 = vrot.slane %v71_v20, %v62_v7  ;;  %v95_v30 = vrot.slane %v75_v21, %v62_v7 }
  0x3a   :  { %v154_v32 = vmul.f32 %v141_v22, %v52_v15  ;;  %v155_v33 = vmul.f32 %v145_v23, %v53_v16  ;;  %v156_v34 = vmul.f32 %v149_v24, %v54_v17  ;;  %v157_v38 = vmul.f32 %v153_v25, %v55_v26 }
  0x3b   :  { %v96_v35 = vmul.f32 %v83_v27, %v52_v15  ;;  %v97_v36 = vmul.f32 %v87_v28, %v53_v16  ;;  %v98_v37 = vmul.f32 %v91_v29, %v54_v17  ;;  %v166_v41 = vrot.slane %v58_v31, %v120_v3 }
  0x3c   :  { %v158_v39 = vadd.f32 %v155_v33, %v154_v32  ;;  %v108_v42 = vrot.slane %v58_v31, %v62_v7  ;;  %v99_v43 = vmul.f32 %v95_v30, %v55_v26  ;;  %v173_v55 = vstv %s186_s3 }
  0x3d   :  { %v100_v44 = vadd.f32 %v97_v36, %v96_v35  ;;  %v167_v47 = vmul.f32 %v166_v41, %v56_v40  ;;  %v116_v58 = vstv %s115_s24 }
  0x3e   :  { %v159_v45 = vadd.f32 %v158_v39, %v156_v34  ;;  %v109_v49 = vmul.f32 %v108_v42, %v56_v40 }
  0x3f   :  { %v101_v46 = vadd.f32 %v100_v44, %v98_v37  ;;  %v168_v51 = vsel %vm110_vm0, %v167_v47, 0.0 }
  0x40   :  { %v160_v48 = vadd.f32 %v159_v45, %v157_v38  ;;  %v111_v52 = vsel %vm110_vm0, %v109_v49, 0.0 }
  0x41   :  { %v102_v50 = vadd.f32 %v101_v46, %v99_v43 }
  0x42   :  { %161 = vadd.xlane.f32.xlu1 %v160_v48 }
  0x43   :  { %103 = vadd.xlane.f32.xlu0 %v102_v50 }
  0x46   :  { %169 = vadd.xlane.f32.xlu1 %v168_v51 }
  0x47   :  { %112 = vadd.xlane.f32.xlu0 %v111_v52 }
  0xcf   :  { %v162_v53 = vpop.xlane.xlu1 %161 }
  0xd0   :  { %v104_v54 = vpop.xlane.xlu0 %103 }
  0xd3   :  { %v170_v56 = vpop.xlane.xlu1 %169 }
  0xd4   :  { %v171_v57 = vadd.f32 %v170_v56, %v162_v53  ;;  %v113_v59 = vpop.xlane.xlu0 %112 }
  0xd5   :  { %v114_v60 = vadd.f32 %v113_v59, %v104_v54 }
  0xd6   :  { %v174_v61 = vadd.f32 %v173_v55, %v171_v57 }
  0xd7   :  { %v117_v62 = vadd.f32 %v116_v58, %v114_v60 }
  0xd9   :  { %v176_v63 = vsel %vm175_vm1, %v117_v62, %v174_v61 }
  0xda   :  { %178 = vst.msk [vmem:[%s327_s4] sm:$0xff] %vm177_vm2, %v176_v63 }
  0xdb   :  { %183 = vsyncpa [#allocation3], 1 }
  0xdc   :  { %184 = vsyncpa [#allocation7], 1 }
  0xdd   :  { %185 = vsyncpa [#allocation4], 1 }

</bundles_post_ra>
